<compile_context>
chip_gen: v7x
topology: tpu7x:2x2x1
jax: 0.10.0
libtpu: 0.0.40
codegen_flags: <defaults>
</compile_context>

<pallas_src>
import functools
import numpy as np

import jax
import jax.numpy as jnp
from jax.experimental import pallas as pl
from jax.experimental.pallas import tpu as pltpu


def _int_pow(q, n):
    """q**n for small non-negative integer n via repeated multiplies (NaN-safe)."""
    if n == 0:
        return jnp.ones_like(q)
    result = None
    base = q
    while n:
        if n & 1:
            result = base if result is None else result * base
        n >>= 1
        if n:
            base = base * base
    return result


def _focal_kernel(x_ref, t_ref, o_ref, *,
                  gamma, smooth, n_imgs, n_cols, tile_s, tiles_per_split,
                  img_block, need_col_mask, need_img_mask, low_precision):
    """Per-tile focal-loss partial reduction.

    x_ref : (NB, C, TS) logits tile (classes on sublane, spatial on lane)
    t_ref : (NB, 1, TS) int32 targets tile
    o_ref : (1, 1, TS)  float32 per-split resident accumulator (lane-dense)
    """
    p_idx = pl.program_id(0)      # split (parallel; dual-TC on v7x)
    n_idx = pl.program_id(1)      # image block
    s_idx = pl.program_id(2)      # spatial tile within split

    # Zero the resident per-split accumulator at the start of each split.
    @pl.when(jnp.logical_and(n_idx == 0, s_idx == 0))
    def _():
        o_ref[...] = jnp.zeros_like(o_ref)

    x = x_ref[...]
    if (not low_precision) or x.dtype == jnp.float32:
        x = x.astype(jnp.float32)
    nb, c, ts = x.shape
    t = t_ref[...]                                           # (NB, 1, TS)

    # Target-selection mask -- no float one-hot is materialized.
    cls_ids = jax.lax.broadcasted_iota(jnp.int32, (nb, c, ts), 1)
    tmask = cls_ids == t                                     # (NB, C, TS) bool

    # Streaming softmax statistics along the class (sublane) axis.
    m = jnp.max(x, axis=1, keepdims=True)                    # (NB, 1, TS)
    sum_e = jnp.sum(jnp.exp(x - m), axis=1, keepdims=True,
                    dtype=jnp.float32)
    x_t = jnp.sum(jnp.where(tmask, x, 0.0), axis=1, keepdims=True,
                  dtype=jnp.float32)
    p_t = jnp.exp(x_t - m.astype(jnp.float32)) / sum_e       # (NB, 1, TS) f32

    eps = jnp.float32(1e-10)
    if smooth:
        # clamp(one_hot, smooth, 1-smooth) dot softmax  ==  off + (on-off)*p_t
        off = float(min(smooth, 1.0 - smooth))
        on = float(1.0 - smooth)
        pt = jnp.float32(off) + jnp.float32(on - off) * p_t + eps
    else:
        pt = p_t + eps

    logpt = jnp.log(pt)
    q = 1.0 - pt
    g = float(gamma)
    if g.is_integer() and 0 <= g <= 16:
        powq = _int_pow(q, int(g))          # NaN-safe even if pt > 1 by eps
    else:
        # Intentional divergence from the reference: clamp the base so a pt
        # that exceeds 1 by eps does not produce NaN.
        powq = jnp.power(jnp.maximum(q, 0.0), jnp.float32(g))
    focal = -powq * logpt                                    # (NB, 1, TS) f32

    # Validity masks, specialized at trace time; use where-select so garbage
    # (possibly NaN/inf) lanes from ragged edge blocks contribute exact zeros.
    if need_col_mask or need_img_mask:
        valid = None
        if need_col_mask:
            tile_idx = p_idx * tiles_per_split + s_idx       # unclamped
            col = tile_idx * tile_s + jax.lax.broadcasted_iota(
                jnp.int32, (nb, 1, ts), 2)
            valid = col < n_cols
        if need_img_mask:
            img = n_idx * img_block + jax.lax.broadcasted_iota(
                jnp.int32, (nb, 1, ts), 0)
            iv = img < n_imgs
            valid = iv if valid is None else jnp.logical_and(valid, iv)
        focal = jnp.where(valid, focal, 0.0)

    o_ref[...] = o_ref[...] + jnp.sum(focal, axis=0, keepdims=True)


class MultiFocalLoss:
    """JAX/Pallas port of the PyTorch MultiFocalLoss module."""

    def __init__(self, num_class=330, alpha=None, gamma=2, balance_index=-1,
                 smooth=None, size_average=True, tile_s=2048,
                 target_tile_bytes=2 * 1024 * 1024,
                 low_precision_compute=False):
        self.num_class = num_class
        self.gamma = gamma
        self.smooth = smooth
        self.size_average = size_average
        assert tile_s % 128 == 0, "tile_s must be a multiple of 128"
        self.tile_s = tile_s
        self.target_tile_bytes = int(target_tile_bytes)
        # bf16 in-kernel elementwise/exp (v6e/v7x only; v5e has no bf16 VPU/EUP).
        self.low_precision_compute = bool(low_precision_compute)

        self._uniform_alpha = alpha is None
        if alpha is None:
            a = np.ones((num_class, 1), dtype=np.float32)
        elif isinstance(alpha, (list, np.ndarray)):
            assert len(alpha) == num_class
            a = np.asarray(alpha, dtype=np.float32).reshape(num_class, 1)
            a = a / a.sum()
        elif isinstance(alpha, float):
            a = np.ones((num_class, 1), dtype=np.float32) * (1.0 - alpha)
            a[balance_index] = alpha
        else:
            raise TypeError('Not support alpha type')
        self.alpha = jnp.asarray(a)                          # (num_class, 1)

        if self.smooth is not None:
            if self.smooth < 0 or self.smooth > 1.0:
                raise ValueError('smooth value should be in [0,1]')

    def __call__(self, x, target):
        # x: (N, C, H, W, ...) or (N, C);  target: (N, H, W, ...) or (N,)
        C = self.num_class
        if x.ndim > 2:
            N_img = x.shape[0]
            logit = x.reshape(N_img, C, -1)                  # (N, C, S) -- free reshape
            tgt = target.reshape(N_img, 1, -1)
        else:
            # TODO(synk): the 2-D (M, C) path still pays one HBM transpose; a
            # class-on-lane kernel variant would remove that copy.
            logit = jnp.transpose(x, (1, 0))[None, :, :]     # (1, C, M)
            tgt = target.reshape(1, 1, -1)
            N_img = 1
        tgt = tgt.astype(jnp.int32)
        S = logit.shape[2]
        M = N_img * S

        # Keep source dtype (e.g. bf16) in HBM; kernel upcasts (or not) on load.
        if not jnp.issubdtype(logit.dtype, jnp.floating):
            logit = logit.astype(jnp.float32)

        # ---- spatial tiling: NO pad copies; ragged edges masked in-kernel ----
        TS = S if S <= self.tile_s else self.tile_s          # TS==S is always legal
        n_spatial_tiles = -(-S // TS)

        # ---- batch several images per grid step for small-spatial inputs ----
        bytes_per_img_tile = C * TS * logit.dtype.itemsize
        NB = max(1, min(N_img, self.target_tile_bytes // max(1, bytes_per_img_tile)))
        n_img_blocks = -(-N_img // NB)

        # ---- 2-way split of the spatial-tile range (dual-TC on v7x) ----
        num_splits = 2 if n_spatial_tiles >= 2 else 1
        tiles_per_split = -(-n_spatial_tiles // num_splits)
        clamp_tiles = num_splits * tiles_per_split > n_spatial_tiles
        last_tile = n_spatial_tiles - 1

        need_col_mask = (S % TS != 0) or clamp_tiles
        need_img_mask = (N_img % NB != 0)

        def in_map(p, n, s):
            tidx = p * tiles_per_split + s
            if clamp_tiles:
                # Keep the DMA in bounds; the kernel masks these steps out
                # entirely (their logical columns are >= S), so no double count.
                tidx = jnp.minimum(tidx, last_tile)
            return (n, 0, tidx)

        kernel = functools.partial(
            _focal_kernel, gamma=self.gamma, smooth=self.smooth,
            n_imgs=N_img, n_cols=S, tile_s=TS,
            tiles_per_split=tiles_per_split, img_block=NB,
            need_col_mask=need_col_mask, need_img_mask=need_img_mask,
            low_precision=self.low_precision_compute)

        partial_sums = pl.pallas_call(
            kernel,
            out_shape=jax.ShapeDtypeStruct((num_splits, 1, TS), jnp.float32),
            grid_spec=pltpu.PrefetchScalarGridSpec(
                num_scalar_prefetch=0,
                grid=(num_splits, n_img_blocks, tiles_per_split),
                in_specs=[
                    pl.BlockSpec((NB, C, TS), in_map),       # logits tile
                    pl.BlockSpec((NB, 1, TS), in_map),       # targets tile
                ],
                out_specs=pl.BlockSpec((1, 1, TS), lambda p, n, s: (p, 0, 0)),
            ),
            compiler_params=pltpu.CompilerParams(
                dimension_semantics=("parallel", "arbitrary", "arbitrary"),
                vmem_limit_bytes=32 * 1024 * 1024),
        )(logit, tgt)

        sum_f = jnp.sum(partial_sums)

        # sum(alpha[target]) depends only on targets -> tiny wrapper-side gather
        # (keeps the per-element kernel loop free of the alpha select+add).
        if self._uniform_alpha:
            sum_a = jnp.float32(M)
        else:
            sum_a = jnp.sum(jnp.take(self.alpha.reshape(-1), tgt.reshape(-1),
                                     axis=0))

        if self.size_average:
            # mean over the (M,1,M) broadcast == mean(alpha_sel) * mean(focal)
            return (sum_a / M) * (sum_f / M)
        # sum over the (M,1,M) broadcast == sum(alpha_sel) * sum(focal)
        return sum_a * sum_f


def _reference(x, target, num_class, gamma, alpha=None, smooth=None,
               size_average=True):
    """Pure-JAX replica of the PyTorch forward (incl. its broadcast semantics)."""
    C = num_class
    p = jax.nn.softmax(x, axis=1)
    if x.ndim > 2:
        N = x.shape[0]
        p = jnp.transpose(p.reshape(N, C, -1), (0, 2, 1)).reshape(-1, C)
    t = target.reshape(-1)
    if alpha is None:
        a = jnp.ones((C,), jnp.float32)
    else:
        a = jnp.asarray(alpha, jnp.float32)
        a = a / a.sum()
    one_hot = jax.nn.one_hot(t, C, dtype=jnp.float32)
    if smooth:
        one_hot = jnp.clip(one_hot, smooth, 1.0 - smooth)
    pt = jnp.sum(one_hot * p, axis=1) + 1e-10
    logpt = jnp.log(pt)
    focal = -jnp.power(1.0 - pt, gamma) * logpt
    alpha_sel = a[t]
    if size_average:
        return jnp.mean(alpha_sel) * jnp.mean(focal)
    return jnp.sum(alpha_sel) * jnp.sum(focal)


if __name__ == "__main__":
    key = jax.random.PRNGKey(0)
    kx, kt, kx2, kt2, kx3, kt3 = jax.random.split(key, 6)

    N, C, H, W = 2, 8, 16, 16          # small shapes; num_class = C
    x = jax.random.normal(kx, (N, C, H, W), dtype=jnp.float32)
    target = jax.random.randint(kt, (N, H, W), 0, C, dtype=jnp.int32)

    # Test 1: default alpha, no smoothing, mean reduction.
    loss_fn = MultiFocalLoss(num_class=C, gamma=2, smooth=None, size_average=True)
    loss = jax.block_until_ready(loss_fn(x, target))
    ref = jax.block_until_ready(
        _reference(x, target, C, 2, alpha=None, smooth=None, size_average=True))
    assert jnp.allclose(loss, ref, rtol=2e-5, atol=1e-6), (loss, ref)

    # Test 2: list alpha (normalized), label smoothing, sum reduction.
    alpha_list = [float(i + 1) for i in range(C)]
    loss_fn2 = MultiFocalLoss(num_class=C, alpha=alpha_list, gamma=2,
                              smooth=0.1, size_average=False)
    loss2 = jax.block_until_ready(loss_fn2(x, target))
    ref2 = jax.block_until_ready(
        _reference(x, target, C, 2, alpha=alpha_list, smooth=0.1,
                   size_average=False))
    assert jnp.allclose(loss2, ref2, rtol=2e-5, atol=1e-6), (loss2, ref2)

    # Test 3: ragged spatial tiles + 2-way split + ragged image block
    # (N=3, C=5, S=287; tile_s=128 -> 3 tiles, split 2-way; NB=2 -> image mask).
    N3, C3, H3, W3 = 3, 5, 7, 41
    x3 = jax.random.normal(kx3, (N3, C3, H3, W3), dtype=jnp.float32)
    t3 = jax.random.randint(kt3, (N3, H3, W3), 0, C3, dtype=jnp.int32)
    loss_fn3 = MultiFocalLoss(num_class=C3, gamma=3, smooth=None,
                              size_average=True, tile_s=128,
                              target_tile_bytes=5120)
    loss3 = jax.block_until_ready(loss_fn3(x3, t3))
    ref3 = jax.block_until_ready(
        _reference(x3, t3, C3, 3, alpha=None, smooth=None, size_average=True))
    assert jnp.allclose(loss3, ref3, rtol=2e-5, atol=1e-6), (loss3, ref3)

    # Test 4: bf16 logits fed from HBM (default f32 in-kernel compute).
    x_bf16 = x.astype(jnp.bfloat16)
    loss4 = jax.block_until_ready(loss_fn(x_bf16, target))
    ref4 = jax.block_until_ready(
        _reference(x_bf16.astype(jnp.float32), target, C, 2, alpha=None,
                   smooth=None, size_average=True))
    assert jnp.allclose(loss4, ref4, rtol=1e-4, atol=1e-6), (loss4, ref4)

    # Test 5: 2-D (M, C) input path.
    M2 = 64
    x2 = jax.random.normal(kx2, (M2, C), dtype=jnp.float32)
    t2 = jax.random.randint(kt2, (M2,), 0, C, dtype=jnp.int32)
    loss5 = jax.block_until_ready(loss_fn(x2, t2))
    ref5 = jax.block_until_ready(
        _reference(x2, t2, C, 2, alpha=None, smooth=None, size_average=True))
    assert jnp.allclose(loss5, ref5, rtol=2e-5, atol=1e-6), (loss5, ref5)

    print("KERNEL_OK")
</pallas_src>

<mosaic_0001>
module attributes {stable_mosaic.version = 11 : i64} {
  func.func @_focal_kernel(%arg0: i32, %arg1: i32, %arg2: i32, %arg3: memref<2x8x256xf32, #tpu.memory_space<vmem>>, %arg4: memref<2x1x256xi32, #tpu.memory_space<vmem>>, %arg5: memref<1x1x256xf32, #tpu.memory_space<vmem>>) attributes {dimension_semantics = [#tpu.dimension_semantics<parallel>, #tpu.dimension_semantics<arbitrary>, #tpu.dimension_semantics<arbitrary>], iteration_bounds = array<i64: 1, 1, 1>, scalar_prefetch = 0 : i64, scratch_operands = 0 : i64, tpu.core_type = #tpu.core_type<tc>, window_params = [{transform_indices = @transform_0, window_bounds = array<i64: 2, 8, 256>}, {transform_indices = @transform_1, window_bounds = array<i64: 2, 1, 256>}, {transform_indices = @transform_2, window_bounds = array<i64: 1, 1, 256>}]} {
    %c0_i32 = arith.constant 0 : i32
    %0 = arith.cmpi eq, %arg1, %c0_i32 : i32
    %c0_i32_0 = arith.constant 0 : i32
    %1 = arith.cmpi eq, %arg2, %c0_i32_0 : i32
    %2 = arith.andi %0, %1 : i1
    %3 = arith.extui %2 : i1 to i32
    %c0_i32_1 = arith.constant 0 : i32
    %4 = arith.cmpi ne, %3, %c0_i32_1 : i32
    scf.if %4 {
      %cst_20 = arith.constant 0.000000e+00 : f32
      %38 = vector.broadcast %cst_20 : f32 to vector<1x1x256xf32>
      %c0_21 = arith.constant 0 : index
      %c0_22 = arith.constant 0 : index
      %c0_23 = arith.constant 0 : index
      %39 = vector.load %arg5[%c0_21, %c0_22, %c0_23] : memref<1x1x256xf32, #tpu.memory_space<vmem>>, vector<1x1x256xf32>
      tpu.vector_store %arg5[%c0_21, %c0_22, %c0_23], %38 {strides = array<i32>} : memref<1x1x256xf32, #tpu.memory_space<vmem>>, vector<1x1x256xf32>,
    } else {
    }
    %c0 = arith.constant 0 : index
    %c0_2 = arith.constant 0 : index
    %c0_3 = arith.constant 0 : index
    %5 = vector.load %arg3[%c0, %c0_2, %c0_3] : memref<2x8x256xf32, #tpu.memory_space<vmem>>, vector<2x8x256xf32>
    %c0_4 = arith.constant 0 : index
    %c0_5 = arith.constant 0 : index
    %c0_6 = arith.constant 0 : index
    %6 = vector.load %arg4[%c0_4, %c0_5, %c0_6] : memref<2x1x256xi32, #tpu.memory_space<vmem>>, vector<2x1x256xi32>
    %7 = tpu.iota {dimensions = array<i32: 1>} : vector<2x8x256xi32>
    %8 = vector.broadcast %6 : vector<2x1x256xi32> to vector<2x8x256xi32>
    %9 = arith.cmpi eq, %7, %8 : vector<2x8x256xi32>
    %cst = arith.constant dense<0xFF800000> : vector<2x256xf32>
    %10 = vector.multi_reduction <maximumf>, %5, %cst [1] : vector<2x8x256xf32> to vector<2x256xf32>
    %11 = vector.shape_cast %10 : vector<2x256xf32> to vector<2x1x256xf32>
    %12 = vector.broadcast %11 : vector<2x1x256xf32> to vector<2x8x256xf32>
    %13 = arith.subf %5, %12 : vector<2x8x256xf32>
    %14 = math.exp %13 : vector<2x8x256xf32>
    %cst_7 = arith.constant dense<0.000000e+00> : vector<2x256xf32>
    %15 = vector.multi_reduction <add>, %14, %cst_7 [1] : vector<2x8x256xf32> to vector<2x256xf32>
    %16 = vector.shape_cast %15 : vector<2x256xf32> to vector<2x1x256xf32>
    %cst_8 = arith.constant 0.000000e+00 : f32
    %17 = vector.broadcast %cst_8 : f32 to vector<2x8x256xf32>
    %18 = arith.select %9, %5, %17 : vector<2x8x256xi1>, vector<2x8x256xf32>
    %cst_9 = arith.constant dense<0.000000e+00> : vector<2x256xf32>
    %19 = vector.multi_reduction <add>, %18, %cst_9 [1] : vector<2x8x256xf32> to vector<2x256xf32>
    %20 = vector.shape_cast %19 : vector<2x256xf32> to vector<2x1x256xf32>
    %21 = arith.subf %20, %11 : vector<2x1x256xf32>
    %22 = math.exp %21 : vector<2x1x256xf32>
    %23 = arith.divf %22, %16 : vector<2x1x256xf32>
    %cst_10 = arith.constant 1.000000e-10 : f32
    %24 = vector.broadcast %cst_10 : f32 to vector<2x1x256xf32>
    %25 = arith.addf %23, %24 : vector<2x1x256xf32>
    %26 = math.log %25 : vector<2x1x256xf32>
    %cst_11 = arith.constant 1.000000e+00 : f32
    %27 = vector.broadcast %cst_11 : f32 to vector<2x1x256xf32>
    %28 = arith.subf %27, %25 : vector<2x1x256xf32>
    %29 = arith.mulf %28, %28 : vector<2x1x256xf32>
    %cst_12 = arith.constant 0.000000e+00 : f32
    %30 = vector.broadcast %cst_12 : f32 to vector<2x1x256xf32>
    %31 = arith.subf %30, %29 : vector<2x1x256xf32>
    %32 = arith.mulf %31, %26 : vector<2x1x256xf32>
    %c0_13 = arith.constant 0 : index
    %c0_14 = arith.constant 0 : index
    %c0_15 = arith.constant 0 : index
    %33 = vector.load %arg5[%c0_13, %c0_14, %c0_15] : memref<1x1x256xf32, #tpu.memory_space<vmem>>, vector<1x1x256xf32>
    %cst_16 = arith.constant dense<0.000000e+00> : vector<1x256xf32>
    %34 = vector.multi_reduction <add>, %32, %cst_16 [0] : vector<2x1x256xf32> to vector<1x256xf32>
    %35 = vector.shape_cast %34 : vector<1x256xf32> to vector<1x1x256xf32>
    %36 = arith.addf %33, %35 : vector<1x1x256xf32>
    %c0_17 = arith.constant 0 : index
    %c0_18 = arith.constant 0 : index
    %c0_19 = arith.constant 0 : index
    %37 = vector.load %arg5[%c0_17, %c0_18, %c0_19] : memref<1x1x256xf32, #tpu.memory_space<vmem>>, vector<1x1x256xf32>
    tpu.vector_store %arg5[%c0_17, %c0_18, %c0_19], %36 {strides = array<i32>} : memref<1x1x256xf32, #tpu.memory_space<vmem>>, vector<1x1x256xf32>,
    return
  }
  func.func @transform_0(%arg0: i32, %arg1: i32, %arg2: i32) -> (i32, i32, i32) {
    %c1_i32 = arith.constant 1 : i32
    %0 = arith.muli %arg0, %c1_i32 : i32
    %1 = arith.addi %0, %arg2 : i32
    %c0_i32 = arith.constant 0 : i32
    %c0_i32_0 = arith.constant 0 : i32
    return %arg1, %c0_i32, %1 : i32, i32, i32
  }
  func.func @transform_1(%arg0: i32, %arg1: i32, %arg2: i32) -> (i32, i32, i32) {
    %c1_i32 = arith.constant 1 : i32
    %0 = arith.muli %arg0, %c1_i32 : i32
    %1 = arith.addi %0, %arg2 : i32
    %c0_i32 = arith.constant 0 : i32
    %c0_i32_0 = arith.constant 0 : i32
    return %arg1, %c0_i32, %1 : i32, i32, i32
  }
  func.func @transform_2(%arg0: i32, %arg1: i32, %arg2: i32) -> (i32, i32, i32) {
    %c0_i32 = arith.constant 0 : i32
    %c0_i32_0 = arith.constant 0 : i32
    %c0_i32_1 = arith.constant 0 : i32
    return %arg0, %c0_i32, %c0_i32_0 : i32, i32, i32
  }
}

</mosaic_0001>

<bundles_post_ra>
// kernel: tpu_custom_call.1
= control target key start
LH: loop header
LB: loop body
LE: loop exit
PB: predicated region body
PF: predicated region fallthrough
CT: control target
= control target key end

     0   :  { %7 = vsyncpa [#allocation3], 0  ;;  %s460_s0 = inlined_call_operand.hbm [shape: f32[2,8,256], index: 0, kind: input, shape index: {}]   ;;  %s461_s1 = inlined_call_operand.hbm [shape: s32[2,1,256], index: 1, kind: input, shape index: {}]   ;;  %s462_s2 = inlined_call_operand.hbm [shape: f32[1,1,256], index: 2, kind: output, shape index: {}]  }
   0x1   :  { %8 = vsyncpa [#allocation6], 0 }
   0x2   :  { %9 = vsyncpa [#allocation4], 0  ;;  %s383_s9 = smov [#allocation2]   ;;  %s311_s13 = scalar_lea.hbm %s460_s0, 512 }
   0x3   :  { %s19_s10 = sshll.u32 %s383_s9, 4  ;;  %p312_p0 = scmp.ne.s32.totalorder %s460_s0, %s311_s13  ;;  %s20_s10 = int_to_ptr.vmem [resolvable:$true] %s19_s10 }
   0x4   :  { %p315_p1 = scmp.lt.u32.totalorder %s311_s13, %s460_s0 }
   0x6   :  { %p317_p2 = pnand %p315_p1, %p312_p0 }
   0x8   :  { %320 = shalt.err (!%p317_p2)
}
   0x9   :  { %s321_s18 = scalar_lea.vmem %s20_s10, 512  ;;  %p326_p4 = scmp.lt.s32.totalorder %s20_s10, %s20_s10 }
   0xa   :  { %p322_p3 = scmp.ne.s32.totalorder %s20_s10, %s321_s18  ;;  %p327_p5 = scmp.lt.s32.totalorder %s321_s18, %s321_s18 }
   0xc   :  { %p328_p6 = por %p327_p5, %p326_p4 }
   0xe   :  { %p329_p7 = pnand %p328_p6, %p322_p3 }
  0x10   :  { %332 = shalt.err (!%p329_p7)
}
  0x11   :  { %s384_s19 = smov 256   ;;  %s385_s20 = smov 16  }
  0x12   :  { %25 = dma.hbm_to_vmem [thread:$0]  %s460_s0, 512, %s20_s10, [#allocation3], %s384_s19, %s384_s19, %s385_s20  }
  0x13   :  { %s386_s23 = smov [#allocation5]   ;;  %s333_s27 = scalar_lea.hbm %s461_s1, 64 }
  0x14   :  { %s35_s24 = sshll.u32 %s386_s23, 4  ;;  %p334_p8 = scmp.ne.s32.totalorder %s461_s1, %s333_s27  ;;  %s36_s24 = int_to_ptr.vmem [resolvable:$true] %s35_s24 }
  0x15   :  { %p337_p9 = scmp.lt.u32.totalorder %s333_s27, %s461_s1 }
  0x17   :  { %p339_p10 = pnand %p337_p9, %p334_p8 }
  0x19   :  { %342 = shalt.err (!%p339_p10)
}
  0x1a   :  { %s343_s4 = scalar_lea.vmem %s36_s24, 64  ;;  %p348_p12 = scmp.lt.s32.totalorder %s36_s24, %s36_s24 }
  0x1b   :  { %p344_p11 = scmp.ne.s32.totalorder %s36_s24, %s343_s4  ;;  %p349_p13 = scmp.lt.s32.totalorder %s343_s4, %s343_s4 }
  0x1d   :  { %p350_p0 = por %p349_p13, %p348_p12 }
  0x1f   :  { %p351_p1 = pnand %p350_p0, %p344_p11 }
  0x21   :  { %354 = shalt.err (!%p351_p1)
}
  0x22   :  { %s387_s0 = smov 32   ;;  %s388_s5 = smov 2  }
  0x23   :  { %41 = dma.hbm_to_vmem [thread:$0]  %s461_s1, 64, %s36_s24, [#allocation6], %s387_s0, %s387_s0, %s388_s5  }
  0x24   :  { %377 = dma.done.wait [#allocation3], 512  }
  0x25   :  { %378 = vsyncadd [#allocation3], 4294966784 }
  0x26   :  { %379 = dma.done.wait [#allocation6], 64  }
  0x27   :  { %380 = vsyncadd [#allocation6], 4294967232  ;;  %v58_v0 = vlaneseq  ;;  %v389_v3 = vmov 0.0   ;;  %v63_v6 = vld [vmem:[#allocation2] sm:$0xff]  ;;  %v64_v7 = vld [vmem:[#allocation2 + $0x8] sm:$0xff]  ;;  %s391_s1 = smov [#allocation7]  }
  0x28   :  { %v65_v8 = vld [vmem:[#allocation2 + $0x10] sm:$0xff]  ;;  %v66_v9 = vld [vmem:[#allocation2 + $0x18] sm:$0xff]  ;;  %v67_v10 = vld [vmem:[#allocation5] sm:$0x3]  ;;  %v91_v12 = vrot.slane %v63_v6, 4  ;;  %v97_v18 = vrot.slane %v64_v7, 4 }
  0x29   :  { %vm431_vm0 = vcmp.lt.s32.totalorder %v58_v0, 256  ;;  %v435_v2 = vshrl.u32 %v58_v0, 7  ;;  %v68_v11 = vld [vmem:[#allocation5 + $0x2] sm:$0x3]  ;;  %v103_v19 = vrot.slane %v65_v8, 4  ;;  %v109_v20 = vrot.slane %v66_v9, 4 }
  0x2a   :  { %62 = vst.msk [vmem:[#allocation7] sm:$0x3] %vm431_vm0, %v389_v3  ;;  %v92_v17 = vmax.f32 %v63_v6, %v91_v12  ;;  %v98_v21 = vmax.f32 %v64_v7, %v97_v18  ;;  %s260_s8 = sshll.u32 %s391_s1, 4  ;;  %s261_s8 = int_to_ptr.vmem [resolvable:$true] %s260_s8 }
  0x2b   :  { %v73_v4 = vsub.s32 0, %v435_v2  ;;  %v77_v5 = vsub.s32 1, %v435_v2  ;;  %v104_v22 = vmax.f32 %v65_v8, %v103_v19  ;;  %v110_v23 = vmax.f32 %v66_v9, %v109_v20  ;;  %s355_s9 = scalar_lea.vmem %s261_s8, 32  ;;  %p360_p3 = scmp.lt.s32.totalorder %s261_s8, %s261_s8 }
  0x2c   :  { %v93_v30 = vrot.slane %v92_v17, 2  ;;  %v99_v32 = vrot.slane %v98_v21, 2  ;;  %p356_p2 = scmp.ne.s32.totalorder %s261_s8, %s355_s9  ;;  %p361_p4 = scmp.lt.s32.totalorder %s355_s9, %s355_s9 }
  0x2d   :  { %v74_v13 = vrot.slane %v67_v10, %v73_v4  ;;  %v78_v14 = vrot.slane %v67_v10, %v77_v5  ;;  %v82_v15 = vrot.slane %v68_v11, %v73_v4  ;;  %v86_v16 = vrot.slane %v68_v11, %v77_v5 }
  0x2e   :  { %v105_v33 = vrot.slane %v104_v22, 2  ;;  %v111_v34 = vrot.slane %v110_v23, 2  ;;  %v94_v36 = vmax.f32 %v92_v17, %v93_v30  ;;  %v100_v38 = vmax.f32 %v98_v21, %v99_v32  ;;  %p362_p5 = por %p361_p4, %p360_p3 }
  0x2f   :  { %vm87_vm1 = vcmp.eq.s32.totalorder %v435_v2, %v74_v13  ;;  %vm88_vm2 = vcmp.eq.s32.totalorder %v435_v2, %v78_v14  ;;  %vm89_vm3 = vcmp.eq.s32.totalorder %v435_v2, %v82_v15  ;;  %vm90_vm4 = vcmp.eq.s32.totalorder %v435_v2, %v86_v16 }
  0x30   :  { %v151_v24 = vsel %vm87_vm1, %v63_v6, 0.0  ;;  %v152_v25 = vsel %vm88_vm2, %v64_v7, 0.0  ;;  %v153_v26 = vsel %vm89_vm3, %v65_v8, 0.0  ;;  %v154_v27 = vsel %vm90_vm4, %v66_v9, 0.0  ;;  %p363_p6 = pnand %p362_p5, %p356_p2 }
  0x31   :  { %v155_v28 = vrot.slane %v151_v24, 4  ;;  %v161_v29 = vrot.slane %v152_v25, 4  ;;  %v167_v31 = vrot.slane %v153_v26, 4  ;;  %v173_v35 = vrot.slane %v154_v27, 4 }
  0x32   :  { %v106_v39 = vmax.f32 %v104_v22, %v105_v33  ;;  %v112_v40 = vmax.f32 %v110_v23, %v111_v34  ;;  %v95_v42 = vrot.slane %v94_v36, 1  ;;  %v101_v44 = vrot.slane %v100_v38, 1 }
  0x33   :  { %v156_v37 = vadd.f32 %v155_v28, %v151_v24  ;;  %v162_v41 = vadd.f32 %v161_v29, %v152_v25  ;;  %v168_v43 = vadd.f32 %v167_v31, %v153_v26  ;;  %v174_v47 = vadd.f32 %v173_v35, %v154_v27 }
  0x34   :  { %v107_v45 = vrot.slane %v106_v39, 1  ;;  %v113_v46 = vrot.slane %v112_v40, 1  ;;  %v96_v48 = vmax.f32 %v94_v36, %v95_v42  ;;  %v102_v50 = vmax.f32 %v100_v38, %v101_v44 }
  0x35   :  { %v157_v49 = vrot.slane %v156_v37, 2  ;;  %v163_v53 = vrot.slane %v162_v41, 2  ;;  %v169_v55 = vrot.slane %v168_v43, 2  ;;  %v175_v59 = vrot.slane %v174_v47, 2 }
  0x36   :  { %v108_v51 = vmax.f32 %v106_v39, %v107_v45  ;;  %v114_v52 = vmax.f32 %v112_v40, %v113_v46  ;;  %v115_v54 = vsub.f32 %v63_v6, %v96_v48  ;;  %v116_v56 = vsub.f32 %v64_v7, %v102_v50 }
  0x37   :  { %v158_v61 = vadd.f32 %v157_v49, %v156_v37  ;;  %v164_v3 = vadd.f32 %v163_v53, %v162_v41  ;;  %v170_v4 = vadd.f32 %v169_v55, %v168_v43  ;;  %v176_v5 = vadd.f32 %v175_v59, %v174_v47 }
  0x38   :  { %v117_v57 = vsub.f32 %v65_v8, %v108_v51  ;;  %v118_v58 = vsub.f32 %v66_v9, %v114_v52  ;;  %v119_v60 = vmul.f32 1.442695, %v115_v54  ;;  %v121_v62 = vmul.f32 1.442695, %v116_v56 }
  0x39   :  { %v159_v10 = vrot.slane %v158_v61, 1  ;;  %v165_v11 = vrot.slane %v164_v3, 1  ;;  %v171_v6 = vrot.slane %v170_v4, 1  ;;  %v177_v12 = vrot.slane %v176_v5, 1 }
  0x3a   :  { %v123_v63 = vmul.f32 1.442695, %v117_v57  ;;  %v125_v0 = vmul.f32 1.442695, %v118_v58  ;;  %279 = vpow2.f32 %v119_v60 }
  0x3b   :  { %281 = vpow2.f32 %v121_v62  ;;  %v160_v7 = vadd.f32 %v159_v10, %v158_v61  ;;  %v166_v8 = vadd.f32 %v165_v11, %v164_v3  ;;  %v172_v9 = vadd.f32 %v171_v6, %v170_v4 }
  0x3c   :  { %283 = vpow2.f32 %v123_v63  ;;  %v178_v14 = vadd.f32 %v177_v12, %v176_v5 }
  0x3d   :  { %285 = vpow2.f32 %v125_v0  ;;  %v179_v17 = vsub.f32 %v160_v7, %v96_v48  ;;  %v180_v20 = vsub.f32 %v166_v8, %v102_v50  ;;  %v181_v24 = vsub.f32 %v172_v9, %v108_v51 }
  0x3e   :  { %v182_v27 = vsub.f32 %v178_v14, %v114_v52 }
  0x3f   :  { %v183_v30 = vmul.f32 1.442695, %v179_v17  ;;  %v185_v33 = vmul.f32 1.442695, %v180_v20  ;;  %v187_v36 = vmul.f32 1.442695, %v181_v24 }
  0x40   :  { %v189_v39 = vmul.f32 1.442695, %v182_v27 }
  0x41   :  { %287 = vpow2.f32 %v183_v30 }
  0x42   :  { %289 = vpow2.f32 %v185_v33 }
  0x43   :  { %291 = vpow2.f32 %v187_v36  ;;  %v227_v36 = vld [vmem:[#allocation7] sm:$0x3] }
  0x44   :  { %v280_v13 = vpop.eup %279  ;;  %293 = vpow2.f32 %v189_v39 }
  0x45   :  { %v282_v15 = vpop.eup %281  ;;  %v127_v16 = vrot.slane %v280_v13, 4 }
  0x46   :  { %v284_v18 = vpop.eup %283  ;;  %v133_v19 = vrot.slane %v282_v15, 4 }
  0x47   :  { %v286_v21 = vpop.eup %285  ;;  %v128_v22 = vadd.f32 %v280_v13, %v127_v16  ;;  %v139_v23 = vrot.slane %v284_v18, 4 }
  0x48   :  { %v134_v25 = vadd.f32 %v282_v15, %v133_v19  ;;  %v145_v26 = vrot.slane %v286_v21, 4  ;;  %v390_v15 = vmov 1966171168  }
  0x49   :  { %v129_v28 = vrot.slane %v128_v22, 2  ;;  %v140_v29 = vadd.f32 %v284_v18, %v139_v23  ;;  %v234_v16 = vunpack.c.l.s4 %v390_v15 }
  0x4a   :  { %v135_v31 = vrot.slane %v134_v25, 2  ;;  %v146_v32 = vadd.f32 %v286_v21, %v145_v26 }
  0x4b   :  { %v130_v34 = vadd.f32 %v129_v28, %v128_v22  ;;  %v141_v35 = vrot.slane %v140_v29, 2  ;;  %v288_v50 = vpop.eup %287  ;;  %v235_v28 = vunpack.c.0.s8 %v234_v16 }
  0x4c   :  { %v136_v37 = vadd.f32 %v135_v31, %v134_v25  ;;  %v147_v38 = vrot.slane %v146_v32, 2  ;;  %v290_v51 = vpop.eup %289 }
  0x4d   :  { %v131_v40 = vrot.slane %v130_v34, 1  ;;  %v142_v41 = vadd.f32 %v141_v35, %v140_v29  ;;  %v292_v52 = vpop.eup %291  ;;  %v238_v33 = vsub.s32 %v235_v28, %v435_v2 }
  0x4e   :  { %v137_v42 = vrot.slane %v136_v37, 1  ;;  %v148_v43 = vadd.f32 %v147_v38, %v146_v32  ;;  %v294_v53 = vpop.eup %293 }
  0x4f   :  { %v132_v44 = vadd.f32 %v131_v40, %v130_v34  ;;  %v143_v45 = vrot.slane %v142_v41, 1 }
  0x50   :  { %v138_v46 = vadd.f32 %v137_v42, %v136_v37  ;;  %v149_v47 = vrot.slane %v148_v43, 1 }
  0x51   :  { %v144_v48 = vadd.f32 %v143_v45, %v142_v41  ;;  %295 = vrcp.f32 %v132_v44 }
  0x52   :  { %v150_v49 = vadd.f32 %v149_v47, %v148_v43  ;;  %297 = vrcp.f32 %v138_v46 }
  0x53   :  { %299 = vrcp.f32 %v144_v48 }
  0x54   :  { %301 = vrcp.f32 %v150_v49 }
  0x5b   :  { %v296_v54 = vpop.eup %295 }
  0x5c   :  { %v298_v55 = vpop.eup %297  ;;  %v192_v56 = vmul.f32 %v296_v54, %v288_v50 }
  0x5d   :  { %v300_v57 = vpop.eup %299  ;;  %v194_v58 = vmul.f32 %v298_v55, %v290_v51 }
  0x5e   :  { %v302_v59 = vpop.eup %301  ;;  %v196_v60 = vmul.f32 %v300_v57, %v292_v52  ;;  %v199_v61 = vadd.f32 1e-10, %v192_v56 }
  0x5f   :  { %v198_v62 = vmul.f32 %v302_v59, %v294_v53  ;;  %v200_v63 = vadd.f32 1e-10, %v194_v58 }
  0x60   :  { %v201_v0 = vadd.f32 1e-10, %v196_v60  ;;  %303 = vlog2.f32 %v199_v61  ;;  %v211_v4 = vsub.f32 1.0, %v199_v61 }
  0x61   :  { %v202_v3 = vadd.f32 1e-10, %v198_v62  ;;  %305 = vlog2.f32 %v200_v63  ;;  %v212_v5 = vsub.f32 1.0, %v200_v63 }
  0x62   :  { %307 = vlog2.f32 %v201_v0  ;;  %v213_v10 = vsub.f32 1.0, %v201_v0  ;;  %v215_v6 = vmul.f32 %v211_v4, %v211_v4 }
  0x63   :  { %309 = vlog2.f32 %v202_v3  ;;  %v214_v11 = vsub.f32 1.0, %v202_v3  ;;  %v216_v12 = vmul.f32 %v212_v5, %v212_v5 }
  0x64   :  { %v217_v7 = vmul.f32 %v213_v10, %v213_v10  ;;  %v219_v9 = vsub.f32 0.0, %v215_v6 }
  0x65   :  { %v218_v8 = vmul.f32 %v214_v11, %v214_v11  ;;  %v220_v14 = vsub.f32 0.0, %v216_v12 }
  0x66   :  { %v221_v19 = vsub.f32 0.0, %v217_v7 }
  0x67   :  { %v222_v22 = vsub.f32 0.0, %v218_v8 }
  0x6a   :  { %v304_v13 = vpop.eup %303 }
  0x6b   :  { %v306_v17 = vpop.eup %305  ;;  %v204_v18 = vmul.f32 0.6931472, %v304_v13 }
  0x6c   :  { %v308_v20 = vpop.eup %307  ;;  %v206_v21 = vmul.f32 0.6931472, %v306_v17 }
  0x6d   :  { %v310_v23 = vpop.eup %309  ;;  %v208_v24 = vmul.f32 0.6931472, %v308_v20  ;;  %v223_v25 = vmul.f32 %v219_v9, %v204_v18 }
  0x6e   :  { %v210_v26 = vmul.f32 0.6931472, %v310_v23  ;;  %v224_v27 = vmul.f32 %v220_v14, %v206_v21 }
  0x6f   :  { %v225_v29 = vmul.f32 %v221_v19, %v208_v24 }
  0x70   :  { %v226_v30 = vmul.f32 %v222_v22, %v210_v26 }
  0x71   :  { %v228_v31 = vadd.f32 %v225_v29, %v223_v25 }
  0x72   :  { %v229_v32 = vadd.f32 %v226_v30, %v224_v27 }
  0x74   :  { %v232_v34 = vcombine.low %v228_v31, %v229_v32 }
  0x76   :  { %v239_v35 = vrot.slane %v232_v34, %v238_v33 }
  0x78   :  { %v246_v37 = vrot.slane %v239_v35, %v238_v33 }
  0x7a   :  { %v248_v38 = vadd.f32 %v246_v37, %v227_v36 }
  0x7c   :  { %253 = vst.msk [vmem:[#allocation7] sm:$0x3] %vm431_vm0, %v248_v38 }
  0x7d   :  { %366 = shalt.err (!%p363_p6)
}
  0x7e   :  { %s367_s12 = scalar_lea.hbm %s462_s2, 32 }
  0x7f   :  { %p368_p7 = scmp.ne.s32.totalorder %s462_s2, %s367_s12  ;;  %p371_p8 = scmp.lt.u32.totalorder %s367_s12, %s462_s2 }
  0x81   :  { %p373_p9 = pnand %p371_p8, %p368_p7 }
  0x83   :  { %376 = shalt.err (!%p373_p9)
}
  0x84   :  { %263 = dma.vmem_to_hbm [thread:$0]  %s261_s8, 32, %s462_s2, [#allocation4]  }
  0x85   :  { %381 = dma.done.wait [#allocation4], 32  }
  0x86   :  { %382 = vsyncadd [#allocation4], 4294967264 }
  0x87   :  { %267 = vsyncpa [#allocation3], 1 }
  0x88   :  { %268 = vsyncpa [#allocation6], 1 }
  0x89   :  { %269 = vsyncpa [#allocation4], 1 }

</bundles_post_ra>
